<compile_context>
chip_gen: v6e
topology: v6e:2x2x1
jax: 0.10.0
libtpu: 0.0.40
codegen_flags: <defaults>
</compile_context>

<pallas_src>
import functools

import jax
import jax.numpy as jnp
from jax import lax
from jax.experimental import pallas as pl
from jax.experimental.pallas import tpu as pltpu


def _space_carver_mask_kernel(pm_ref, q_ref, ref_ref, out_ref, *, eps):
    """One (batch b, point-tile t) grid step.

    pm_ref : (B, 12)    SMEM (scalar prefetch), fused P = [K R | K t], row-major flat
    q_ref  : (1, 3, tT) VMEM f32, world-space points, point axis on lanes
    ref_ref: (1, H, W)  VMEM, reference mask image (bf16 / int8 / fp8 / f32)
    out_ref: (1, 1, tT) VMEM int8, 1 = carve ("remove") this point
    """
    H = ref_ref.shape[1]
    W = ref_ref.shape[2]
    b = pl.program_id(0)

    q = q_ref[0]                                # (3, tT) f32
    x = q[0:1, :]
    y = q[1:2, :]
    z = q[2:3, :]

    # c = [K R | K t] [q; 1]: 9 scalar*vector FMAs on the VPU using SMEM scalars.
    # Avoids a padded 3x3 f32 MXU pass and keeps the MXU free for the gather below.
    c0 = pm_ref[b, 0] * x + pm_ref[b, 1] * y + pm_ref[b, 2] * z + pm_ref[b, 3]
    c1 = pm_ref[b, 4] * x + pm_ref[b, 5] * y + pm_ref[b, 6] * z + pm_ref[b, 7]
    c2 = pm_ref[b, 8] * x + pm_ref[b, 9] * y + pm_ref[b, 10] * z + pm_ref[b, 11]

    # Perspective divide: approximate EUP reciprocal (otherwise-idle slot) + 2 muls.
    invz = pl.reciprocal(c2, approx=True)       # (1, tT)
    gx = c0 * invz
    gy = c1 * invz

    # F.grid_sample(mode='nearest', padding_mode='zeros', align_corners=False):
    #   fx = ((gx + 1) * W - 1) * 0.5  ==  gx * (0.5 W) + 0.5 (W - 1)   (constants folded)
    fx = gx * (0.5 * W) + 0.5 * (W - 1)
    fy = gy * (0.5 * H) + 0.5 * (H - 1)
    ix = jnp.round(fx).astype(jnp.int32)
    iy = jnp.round(fy).astype(jnp.int32)
    # NaN coordinates (points with c2 == 0) must land out-of-bounds -> sample 0 -> carve.
    not_nan = (fx == fx) & (fy == fy)
    in_bounds = not_nan & (ix >= 0) & (ix < W) & (iy >= 0) & (iy < H)
    ixc = jnp.clip(ix, 0, W - 1)
    iyc = jnp.clip(iy, 0, H - 1)

    # Nearest-neighbour gather, no data-dependent addressing:
    #   stage 1 (MXU):  wt[h, t] = sum_w ref[h, w] * [w == ix[t]]  ==  ref[h, ix[t]]
    #   stage 2 (VPU select + XLU sublane reduce): val[t] = wt[iy[t], t]
    # Iotas are (W,1)/(H,1) columns; the broadcast happens inside the compare, so no
    # large iota tensors are regenerated per grid step.
    col_iota = lax.broadcasted_iota(jnp.int32, (W, 1), 0)       # (W, 1)
    row_iota = lax.broadcasted_iota(jnp.int32, (H, 1), 0)       # (H, 1)
    ref_img = ref_ref[0]                                        # (H, W)
    col_oh = (col_iota == ixc).astype(ref_img.dtype)            # (W, tT)
    acc_dtype = jnp.int32 if jnp.issubdtype(ref_img.dtype, jnp.integer) else jnp.float32
    wt = jnp.dot(ref_img, col_oh, preferred_element_type=acc_dtype)     # (H, tT)
    row_mask = row_iota == iyc                                  # (H, tT) bool
    val = jnp.sum(jnp.where(row_mask, wt, 0), axis=0, keepdims=True)    # (1, tT)
    val = jnp.where(in_bounds, val.astype(jnp.float32), 0.0)    # padding_mode='zeros'

    out_ref[0] = (val < (1.0 - eps)).astype(jnp.int8)           # (1, tT)


def _tpu_vmem_capacity_bytes():
    try:
        return int(pltpu.get_tpu_info().vmem_capacity_bytes)
    except Exception:
        return 64 << 20      # conservative (v7x-sized) fallback


def _pick_gather_dtype(H, W, assume_binary_mask):
    """Operand dtype for the MXU one-hot gather matmul."""
    if not assume_binary_mask:
        return jnp.float32                 # exact for arbitrary (soft) mask values
    if H * W < 128 * 128:
        # Small images: kernel is VPU-bound, not MXU-bound; bf16 is exact for {0,1}
        # and halves reference HBM/VMEM traffic.
        return jnp.bfloat16
    # Large images: MXU-bound. v5e/v6e (128 MiB VMEM) have an int8 MXU path; v7x
    # (64 MiB VMEM) has fp8 instead of an int MXU. 0 and 1 are exact in both.
    if _tpu_vmem_capacity_bytes() <= (64 << 20):
        fp8 = getattr(jnp, "float8_e4m3fn", None)
        return fp8 if fp8 is not None else jnp.bfloat16
    return jnp.int8


def _choose_tiling(B, T, H, W, gather_dtype, tile_t):
    """Pick the point-tile size and an explicit scoped-VMEM limit from H*W and chip VMEM."""
    vmem_cap = _tpu_vmem_capacity_bytes()
    gd_bytes = jnp.dtype(gather_dtype).itemsize
    budget = int(0.35 * vmem_cap)          # leave headroom for double-buffering etc.

    def est_bytes(tt):
        body = tt * (W * (gd_bytes + 1)    # (W, tT) one-hot + compare mask
                     + H * 5               # (H, tT) f32/i32 accumulator + row mask
                     + 64)                 # assorted (1, tT)/(3, tT) vectors
        blocks = 2 * (8 * tt * 4 + tt)     # double-buffered q (sublane-padded) + out
        blocks += 2 * H * W * gd_bytes     # double-buffered reference image
        return body + blocks

    if tile_t is not None:
        assert T % tile_t == 0, "T must be divisible by tile_t"
        tt = tile_t
    else:
        cands = [c for c in (2048, 1024, 512, 256, 128) if T % c == 0]
        if B == 1:
            # Keep >= 2 grid steps so both v7x TensorCores get work.
            non_full = [c for c in cands if c < T]
            cands = non_full or cands
        tt = None
        for c in cands:
            if est_bytes(c) <= budget:
                tt = c
                break
        if tt is None:
            tt = cands[-1] if cands else T
        # TODO(synk): for very large reference images, add a third grid axis over
        # H-blocks with a persistent (1, tT) accumulator instead of only shrinking tT.
    vmem_limit = min(int(0.8 * vmem_cap), max(32 << 20, 2 * est_bytes(tt)))
    return tt, int(vmem_limit)


def space_carver_mask(query_pts, reference, world_mat, camera_mat, *, eps=0.03,
                      tile_t=None, gather_dtype=None, assume_binary_mask=True,
                      points_channel_major=False):
    """Pallas equivalent of SpaceCarver.apply(..., mode='mask')."""
    if points_channel_major:
        B, C3, T = query_pts.shape
        q3t = query_pts.astype(jnp.float32)                         # (B, 3, T)
    else:
        B, T, C3 = query_pts.shape
        # NOTE: this transpose is an extra HBM read+write of the point cloud; feed
        # channel-major (B, 3, T) points with points_channel_major=True to skip it.
        q3t = jnp.transpose(query_pts, (0, 2, 1)).astype(jnp.float32)
    assert C3 == 3
    Bc, C, H, W = reference.shape
    assert Bc == B and C == 1, "reference must be (B, 1, H, W) like the PyTorch code"

    gd = jnp.dtype(gather_dtype if gather_dtype is not None
                   else _pick_gather_dtype(H, W, assume_binary_mask))
    ref_img = reference[:, 0].astype(gd)                            # (B, H, W)

    # Fuse extrinsics + intrinsics once:  P = [K R | K t]  -> (B, 12) SMEM scalars.
    pm = jnp.einsum('bij,bjk->bik', camera_mat.astype(jnp.float32),
                    world_mat.astype(jnp.float32)).reshape(B, 12)

    tT, vmem_limit = _choose_tiling(B, T, H, W, gd, tile_t)
    nT = T // tT

    kernel = functools.partial(_space_carver_mask_kernel, eps=float(eps))
    cost = pl.CostEstimate(
        flops=int(B * T * (2 * H * W + 30)),
        transcendentals=int(B * T),
        bytes_accessed=int(B * (3 * T * 4 + H * W * gd.itemsize + 12 * 4 + T)),
    )

    out = pl.pallas_call(
        kernel,
        out_shape=jax.ShapeDtypeStruct((B, 1, T), jnp.int8),
        grid_spec=pltpu.PrefetchScalarGridSpec(
            num_scalar_prefetch=1,                      # pm -> SMEM scalars
            grid=(B, nT),
            in_specs=[
                # query tile: advances with (b, t), point axis on lanes
                pl.BlockSpec((1, 3, tT), lambda b, t, pm_s: (b, 0, t)),
                # reference image: constant across t -> DMA'd once per batch element
                pl.BlockSpec((1, H, W), lambda b, t, pm_s: (b, 0, 0)),
            ],
            out_specs=pl.BlockSpec((1, 1, tT), lambda b, t, pm_s: (b, 0, t)),
        ),
        compiler_params=pltpu.CompilerParams(
            dimension_semantics=("parallel", "parallel"),
            vmem_limit_bytes=vmem_limit),
        cost_estimate=cost,
    )(pm, q3t, ref_img)

    return out[:, 0, :] != 0     # (B, T) bool, same as the PyTorch output


class SpaceCarverModule:
    """JAX/Pallas version of im2mesh SpaceCarverModule (inference semantics)."""

    def __init__(self, mode='mask', eps=0.03, training_drop_carving_p=0.1,
                 invalid_value=0.0):
        assert mode in ('mask', 'depth')
        assert mode == 'mask'  # TODO(synk): 'depth' carving mode (scaled_z vs cor_z) not implemented
        self.mode = mode
        self.eps = eps
        self.training_drop_carving_p = training_drop_carving_p
        self.invalid_value = invalid_value

    def __call__(self, query_pts, reference, cor_occ=None,
                 world_mat=None, camera_mat=None, replace=False):
        assert world_mat is not None and camera_mat is not None
        remove_idx_bool = space_carver_mask(
            query_pts, reference, world_mat, camera_mat, eps=self.eps)
        # TODO(synk): the training-time `replace` branch (torch.nonzero / randint /
        # index_select with dynamic shapes + in-place mutation of query_pts/cor_occ)
        # has no clean static-shape Pallas equivalent; eval / replace=False path only.
        return remove_idx_bool


def _reference_jax(query_pts, reference, world_mat, camera_mat, eps):
    """Pure-JAX (f32, exact divide) reference. Also returns projected pixel coords."""
    R = world_mat[:, :, :3]
    t = world_mat[:, :, 3]
    p = jnp.einsum('bij,bnj->bni', R, query_pts) + t[:, None, :]
    c = jnp.einsum('bij,bnj->bni', camera_mat, p)
    gx = c[..., 0] / c[..., 2]
    gy = c[..., 1] / c[..., 2]
    H, W = reference.shape[2], reference.shape[3]
    fx = ((gx + 1.0) * W - 1.0) * 0.5
    fy = ((gy + 1.0) * H - 1.0) * 0.5
    ix = jnp.round(fx).astype(jnp.int32)
    iy = jnp.round(fy).astype(jnp.int32)
    inb = (ix >= 0) & (ix < W) & (iy >= 0) & (iy < H)
    ixc = jnp.clip(ix, 0, W - 1)
    iyc = jnp.clip(iy, 0, H - 1)
    img = reference[:, 0]
    val = jax.vmap(lambda im, yy, xx: im[yy, xx])(img, iyc, ixc)
    val = jnp.where(inb, val, 0.0)
    return val < (1.0 - eps), fx, fy


if __name__ == "__main__":
    B, T, H, W = 2, 256, 16, 16
    key = jax.random.PRNGKey(0)

    # query points in a small box in front of the camera
    query_pts = jax.random.uniform(key, (B, T, 3), jnp.float32, -0.5, 0.5)

    # deterministic binary reference mask (checkerboard) -> mix of carved / kept points
    yy = jnp.arange(H)[:, None]
    xx = jnp.arange(W)[None, :]
    mask = ((yy + xx) % 2 == 0).astype(jnp.float32)
    reference = jnp.broadcast_to(mask, (B, 1, H, W)).astype(jnp.float32)

    # extrinsics: identity rotation, translate +2 along z (points in front, z in [1.5, 2.5])
    world_mat = jnp.broadcast_to(
        jnp.array([[1.0, 0.0, 0.0, 0.0],
                   [0.0, 1.0, 0.0, 0.0],
                   [0.0, 0.0, 1.0, 2.0]], dtype=jnp.float32),
        (B, 3, 4))
    # batch 0: unit focal (all points land in-frame); batch 1: f=6 (many points project
    # outside the image -> exercises the padding_mode='zeros' carving path)
    camera_mat = jnp.stack([jnp.eye(3, dtype=jnp.float32),
                            jnp.diag(jnp.array([6.0, 6.0, 1.0], jnp.float32))])

    # explicit tiled-T path (2 point-tiles of 128 per batch element)
    out = space_carver_mask(query_pts, reference, world_mat, camera_mat,
                            eps=0.03, tile_t=128)
    out = jax.block_until_ready(out)
    assert out.shape == (B, T) and out.dtype == jnp.bool_

    # module-style call (auto tile / auto gather dtype) must agree
    module = SpaceCarverModule(mode='mask', eps=0.03)
    out_mod = module(query_pts, reference, world_mat=world_mat, camera_mat=camera_mat)
    out_mod = jax.block_until_ready(out_mod)
    assert out_mod.shape == (B, T) and out_mod.dtype == jnp.bool_
    assert bool(jnp.all(out == out_mod))

    # channel-major fast path (skips the wrapper-side transpose) must agree too
    out_cm = space_carver_mask(jnp.transpose(query_pts, (0, 2, 1)), reference,
                               world_mat, camera_mat, eps=0.03,
                               points_channel_major=True)
    out_cm = jax.block_until_ready(out_cm)
    assert bool(jnp.all(out == out_cm))

    # correctness vs exact f32 reference: exact match away from .5 rounding boundaries
    # (approx reciprocal / FMA folding can only flip pixels within a tiny margin of one)
    ref_out, fx, fy = _reference_jax(query_pts, reference, world_mat, camera_mat, 0.03)
    margin = 0.05
    safe = ((jnp.abs((fx - jnp.floor(fx)) - 0.5) > margin) &
            (jnp.abs((fy - jnp.floor(fy)) - 0.5) > margin))
    n_safe = int(jnp.sum(safe))
    assert n_safe > 0.5 * B * T, f"degenerate test: only {n_safe} boundary-safe points"
    mismatch = int(jnp.sum(jnp.where(safe, out != ref_out, False)))
    assert mismatch == 0, f"{mismatch} mismatches on boundary-safe points"
    # sanity: both carved and kept points occur
    assert bool(jnp.any(out)) and bool(jnp.any(~out))

    print("KERNEL_OK")
</pallas_src>

<mosaic_0001>
module attributes {stable_mosaic.version = 11 : i64} {
  func.func @_space_carver_mask_kernel(%arg0: i32, %arg1: i32, %arg2: memref<2x12xf32, #tpu.memory_space<smem>>, %arg3: memref<1x3x128xf32, #tpu.memory_space<vmem>>, %arg4: memref<1x16x16xbf16, #tpu.memory_space<vmem>>, %arg5: memref<1x1x128xi8, #tpu.memory_space<vmem>>) attributes {dimension_semantics = [#tpu.dimension_semantics<parallel>, #tpu.dimension_semantics<parallel>], iteration_bounds = array<i64: 2, 2>, scalar_prefetch = 1 : i64, scratch_operands = 0 : i64, tpu.core_type = #tpu.core_type<tc>, window_params = [{transform_indices = @transform_0, window_bounds = array<i64: 1, 3, 128>}, {transform_indices = @transform_1, window_bounds = array<i64: 1, 16, 16>}, {transform_indices = @transform_2, window_bounds = array<i64: 1, 1, 128>}]} {
    %c0 = arith.constant 0 : index
    %c0_0 = arith.constant 0 : index
    %c0_1 = arith.constant 0 : index
    %0 = vector.load %arg3[%c0, %c0_0, %c0_1] : memref<1x3x128xf32, #tpu.memory_space<vmem>>, vector<1x3x128xf32>
    %1 = vector.shape_cast %0 : vector<1x3x128xf32> to vector<3x128xf32>
    %2 = vector.extract_strided_slice %1 {offsets = [0, 0], sizes = [1, 128], strides = [1, 1]} : vector<3x128xf32> to vector<1x128xf32>
    %3 = vector.extract_strided_slice %1 {offsets = [1, 0], sizes = [1, 128], strides = [1, 1]} : vector<3x128xf32> to vector<1x128xf32>
    %4 = vector.extract_strided_slice %1 {offsets = [2, 0], sizes = [1, 128], strides = [1, 1]} : vector<3x128xf32> to vector<1x128xf32>
    %5 = arith.index_cast %arg0 : i32 to index
    %c0_2 = arith.constant 0 : index
    %6 = memref.load %arg2[%5, %c0_2] : memref<2x12xf32, #tpu.memory_space<smem>>
    %7 = vector.broadcast %6 : f32 to vector<1x128xf32>
    %8 = arith.mulf %7, %2 : vector<1x128xf32>
    %9 = arith.index_cast %arg0 : i32 to index
    %c1 = arith.constant 1 : index
    %10 = memref.load %arg2[%9, %c1] : memref<2x12xf32, #tpu.memory_space<smem>>
    %11 = vector.broadcast %10 : f32 to vector<1x128xf32>
    %12 = arith.mulf %11, %3 : vector<1x128xf32>
    %13 = arith.addf %8, %12 : vector<1x128xf32>
    %14 = arith.index_cast %arg0 : i32 to index
    %c2 = arith.constant 2 : index
    %15 = memref.load %arg2[%14, %c2] : memref<2x12xf32, #tpu.memory_space<smem>>
    %16 = vector.broadcast %15 : f32 to vector<1x128xf32>
    %17 = arith.mulf %16, %4 : vector<1x128xf32>
    %18 = arith.addf %13, %17 : vector<1x128xf32>
    %19 = arith.index_cast %arg0 : i32 to index
    %c3 = arith.constant 3 : index
    %20 = memref.load %arg2[%19, %c3] : memref<2x12xf32, #tpu.memory_space<smem>>
    %21 = vector.broadcast %20 : f32 to vector<1x128xf32>
    %22 = arith.addf %18, %21 : vector<1x128xf32>
    %23 = arith.index_cast %arg0 : i32 to index
    %c4 = arith.constant 4 : index
    %24 = memref.load %arg2[%23, %c4] : memref<2x12xf32, #tpu.memory_space<smem>>
    %25 = vector.broadcast %24 : f32 to vector<1x128xf32>
    %26 = arith.mulf %25, %2 : vector<1x128xf32>
    %27 = arith.index_cast %arg0 : i32 to index
    %c5 = arith.constant 5 : index
    %28 = memref.load %arg2[%27, %c5] : memref<2x12xf32, #tpu.memory_space<smem>>
    %29 = vector.broadcast %28 : f32 to vector<1x128xf32>
    %30 = arith.mulf %29, %3 : vector<1x128xf32>
    %31 = arith.addf %26, %30 : vector<1x128xf32>
    %32 = arith.index_cast %arg0 : i32 to index
    %c6 = arith.constant 6 : index
    %33 = memref.load %arg2[%32, %c6] : memref<2x12xf32, #tpu.memory_space<smem>>
    %34 = vector.broadcast %33 : f32 to vector<1x128xf32>
    %35 = arith.mulf %34, %4 : vector<1x128xf32>
    %36 = arith.addf %31, %35 : vector<1x128xf32>
    %37 = arith.index_cast %arg0 : i32 to index
    %c7 = arith.constant 7 : index
    %38 = memref.load %arg2[%37, %c7] : memref<2x12xf32, #tpu.memory_space<smem>>
    %39 = vector.broadcast %38 : f32 to vector<1x128xf32>
    %40 = arith.addf %36, %39 : vector<1x128xf32>
    %41 = arith.index_cast %arg0 : i32 to index
    %c8 = arith.constant 8 : index
    %42 = memref.load %arg2[%41, %c8] : memref<2x12xf32, #tpu.memory_space<smem>>
    %43 = vector.broadcast %42 : f32 to vector<1x128xf32>
    %44 = arith.mulf %43, %2 : vector<1x128xf32>
    %45 = arith.index_cast %arg0 : i32 to index
    %c9 = arith.constant 9 : index
    %46 = memref.load %arg2[%45, %c9] : memref<2x12xf32, #tpu.memory_space<smem>>
    %47 = vector.broadcast %46 : f32 to vector<1x128xf32>
    %48 = arith.mulf %47, %3 : vector<1x128xf32>
    %49 = arith.addf %44, %48 : vector<1x128xf32>
    %50 = arith.index_cast %arg0 : i32 to index
    %c10 = arith.constant 10 : index
    %51 = memref.load %arg2[%50, %c10] : memref<2x12xf32, #tpu.memory_space<smem>>
    %52 = vector.broadcast %51 : f32 to vector<1x128xf32>
    %53 = arith.mulf %52, %4 : vector<1x128xf32>
    %54 = arith.addf %49, %53 : vector<1x128xf32>
    %55 = arith.index_cast %arg0 : i32 to index
    %c11 = arith.constant 11 : index
    %56 = memref.load %arg2[%55, %c11] : memref<2x12xf32, #tpu.memory_space<smem>>
    %57 = vector.broadcast %56 : f32 to vector<1x128xf32>
    %58 = arith.addf %54, %57 : vector<1x128xf32>
    %59 = tpu.reciprocal %58 {approx = true} : vector<1x128xf32> -> vector<1x128xf32>
    %60 = arith.mulf %22, %59 : vector<1x128xf32>
    %61 = arith.mulf %40, %59 : vector<1x128xf32>
    %cst = arith.constant 8.000000e+00 : f32
    %62 = vector.broadcast %cst : f32 to vector<1x128xf32>
    %63 = arith.mulf %60, %62 : vector<1x128xf32>
    %cst_3 = arith.constant 7.500000e+00 : f32
    %64 = vector.broadcast %cst_3 : f32 to vector<1x128xf32>
    %65 = arith.addf %63, %64 : vector<1x128xf32>
    %cst_4 = arith.constant 8.000000e+00 : f32
    %66 = vector.broadcast %cst_4 : f32 to vector<1x128xf32>
    %67 = arith.mulf %61, %66 : vector<1x128xf32>
    %cst_5 = arith.constant 7.500000e+00 : f32
    %68 = vector.broadcast %cst_5 : f32 to vector<1x128xf32>
    %69 = arith.addf %67, %68 : vector<1x128xf32>
    %70 = math.roundeven %65 : vector<1x128xf32>
    %71 = arith.fptosi %70 : vector<1x128xf32> to vector<1x128xi32>
    %72 = math.roundeven %69 : vector<1x128xf32>
    %73 = arith.fptosi %72 : vector<1x128xf32> to vector<1x128xi32>
    %74 = arith.cmpf oeq, %65, %65 : vector<1x128xf32>
    %75 = arith.cmpf oeq, %69, %69 : vector<1x128xf32>
    %76 = arith.andi %74, %75 : vector<1x128xi1>
    %c0_i32 = arith.constant 0 : i32
    %77 = vector.broadcast %c0_i32 : i32 to vector<1x128xi32>
    %78 = arith.cmpi sge, %71, %77 : vector<1x128xi32>
    %79 = arith.andi %76, %78 : vector<1x128xi1>
    %c16_i32 = arith.constant 16 : i32
    %80 = vector.broadcast %c16_i32 : i32 to vector<1x128xi32>
    %81 = arith.cmpi slt, %71, %80 : vector<1x128xi32>
    %82 = arith.andi %79, %81 : vector<1x128xi1>
    %c0_i32_6 = arith.constant 0 : i32
    %83 = vector.broadcast %c0_i32_6 : i32 to vector<1x128xi32>
    %84 = arith.cmpi sge, %73, %83 : vector<1x128xi32>
    %85 = arith.andi %82, %84 : vector<1x128xi1>
    %c16_i32_7 = arith.constant 16 : i32
    %86 = vector.broadcast %c16_i32_7 : i32 to vector<1x128xi32>
    %87 = arith.cmpi slt, %73, %86 : vector<1x128xi32>
    %88 = arith.andi %85, %87 : vector<1x128xi1>
    %c0_i32_8 = arith.constant 0 : i32
    %c15_i32 = arith.constant 15 : i32
    %89 = vector.broadcast %c0_i32_8 : i32 to vector<1x128xi32>
    %90 = arith.maxsi %89, %71 : vector<1x128xi32>
    %91 = vector.broadcast %c15_i32 : i32 to vector<1x128xi32>
    %92 = arith.minsi %91, %90 : vector<1x128xi32>
    %c0_i32_9 = arith.constant 0 : i32
    %c15_i32_10 = arith.constant 15 : i32
    %93 = vector.broadcast %c0_i32_9 : i32 to vector<1x128xi32>
    %94 = arith.maxsi %93, %73 : vector<1x128xi32>
    %95 = vector.broadcast %c15_i32_10 : i32 to vector<1x128xi32>
    %96 = arith.minsi %95, %94 : vector<1x128xi32>
    %97 = tpu.iota {dimensions = array<i32: 0>} : vector<16x1xi32>
    %98 = tpu.iota {dimensions = array<i32: 0>} : vector<16x1xi32>
    %c0_11 = arith.constant 0 : index
    %c0_12 = arith.constant 0 : index
    %c0_13 = arith.constant 0 : index
    %99 = vector.load %arg4[%c0_11, %c0_12, %c0_13] : memref<1x16x16xbf16, #tpu.memory_space<vmem>>, vector<1x16x16xbf16>
    %100 = vector.shape_cast %99 : vector<1x16x16xbf16> to vector<16x16xbf16>
    %101 = vector.broadcast %97 : vector<16x1xi32> to vector<16x128xi32>
    %102 = vector.broadcast %92 : vector<1x128xi32> to vector<16x128xi32>
    %103 = arith.cmpi eq, %101, %102 : vector<16x128xi32>
    %104 = arith.extui %103 : vector<16x128xi1> to vector<16x128xi32>
    %105 = arith.sitofp %104 : vector<16x128xi32> to vector<16x128xf32>
    %106 = arith.truncf %105 : vector<16x128xf32> to vector<16x128xbf16>
    %cst_14 = arith.constant dense<0.000000e+00> : vector<16x128xf32>
    %107 = tpu.matmul %100, %106, %cst_14 {dimension_numbers = #tpu.dot_dimension_numbers<[1], [0], [0], [1], [0, 0, 1, 1], [], []>} : vector<16x16xbf16>, vector<16x128xbf16>, vector<16x128xf32> -> vector<16x128xf32>
    %108 = vector.broadcast %98 : vector<16x1xi32> to vector<16x128xi32>
    %109 = vector.broadcast %96 : vector<1x128xi32> to vector<16x128xi32>
    %110 = arith.cmpi eq, %108, %109 : vector<16x128xi32>
    %c0_i32_15 = arith.constant 0 : i32
    %111 = arith.sitofp %c0_i32_15 : i32 to f32
    %112 = vector.broadcast %111 : f32 to vector<16x128xf32>
    %113 = arith.select %110, %107, %112 : vector<16x128xi1>, vector<16x128xf32>
    %cst_16 = arith.constant dense<0.000000e+00> : vector<128xf32>
    %114 = vector.multi_reduction <add>, %113, %cst_16 [0] : vector<16x128xf32> to vector<128xf32>
    %115 = vector.shape_cast %114 : vector<128xf32> to vector<1x128xf32>
    %cst_17 = arith.constant 0.000000e+00 : f32
    %116 = vector.broadcast %cst_17 : f32 to vector<1x128xf32>
    %117 = arith.select %88, %115, %116 : vector<1x128xi1>, vector<1x128xf32>
    %cst_18 = arith.constant 9.700000e-01 : f32
    %118 = vector.broadcast %cst_18 : f32 to vector<1x128xf32>
    %119 = arith.cmpf olt, %117, %118 : vector<1x128xf32>
    %120 = arith.extui %119 : vector<1x128xi1> to vector<1x128xi8>
    %c0_19 = arith.constant 0 : index
    %c0_20 = arith.constant 0 : index
    %c0_21 = arith.constant 0 : index
    %121 = vector.load %arg5[%c0_19, %c0_20, %c0_21] : memref<1x1x128xi8, #tpu.memory_space<vmem>>, vector<1x1x128xi8>
    %122 = vector.shape_cast %121 : vector<1x1x128xi8> to vector<1x128xi8>
    %123 = vector.shape_cast %120 : vector<1x128xi8> to vector<1x1x128xi8>
    tpu.vector_store %arg5[%c0_19, %c0_20, %c0_21], %123 {strides = array<i32>} : memref<1x1x128xi8, #tpu.memory_space<vmem>>, vector<1x1x128xi8>,
    return
  }
  func.func @transform_0(%arg0: i32, %arg1: i32, %arg2: memref<2x12xf32, #tpu.memory_space<smem>>) -> (i32, i32, i32) {
    %c0_i32 = arith.constant 0 : i32
    %c0_i32_0 = arith.constant 0 : i32
    return %arg0, %c0_i32, %arg1 : i32, i32, i32
  }
  func.func @transform_1(%arg0: i32, %arg1: i32, %arg2: memref<2x12xf32, #tpu.memory_space<smem>>) -> (i32, i32, i32) {
    %c0_i32 = arith.constant 0 : i32
    %c0_i32_0 = arith.constant 0 : i32
    %c0_i32_1 = arith.constant 0 : i32
    return %arg0, %c0_i32, %c0_i32_0 : i32, i32, i32
  }
  func.func @transform_2(%arg0: i32, %arg1: i32, %arg2: memref<2x12xf32, #tpu.memory_space<smem>>) -> (i32, i32, i32) {
    %c0_i32 = arith.constant 0 : i32
    %c0_i32_0 = arith.constant 0 : i32
    return %arg0, %c0_i32, %arg1 : i32, i32, i32
  }
}

</mosaic_0001>

<bundles_post_ra>
// kernel: tpu_custom_call.1
= control target key start
LH: loop header
LB: loop body
LE: loop exit
PB: predicated region body
PF: predicated region fallthrough
CT: control target
= control target key end

     0   :  { %s739_s0 = inlined_call_operand.vmem [shape: f32[2,12], index: 0, kind: input, shape index: {}]   ;;  %s740_s1 = inlined_call_operand.vmem [shape: f32[2,3,256], index: 1, kind: input, shape index: {}]   ;;  %s741_s2 = inlined_call_operand.vmem [shape: bf16[2,16,16], index: 2, kind: input, shape index: {}]   ;;  %s742_s3 = inlined_call_operand.vmem [shape: s8[2,1,256], index: 3, kind: output, shape index: {}]  }
   0x1   :  { %s8_s14 = sshll.u32 %s739_s0, 4  ;;  %s9_s14 = int_to_ptr.vmem [resolvable:$true] %s8_s14 }
   0x2   :  { %s570_s15 = scalar_lea.vmem %s9_s14, 32  ;;  %p575_p1 = scmp.lt.s32.totalorder %s9_s14, %s9_s14 }
   0x3   :  { %p571_p0 = scmp.ne.s32.totalorder %s9_s14, %s570_s15  ;;  %p576_p2 = scmp.lt.s32.totalorder %s570_s15, %s570_s15 }
   0x5   :  { %p577_p3 = por %p576_p2, %p575_p1 }
   0x7   :  { %p578_p4 = pnand %p577_p3, %p571_p0 }
   0x9   :  { %581 = shalt.err (!%p578_p4)  }
   0xa   :  { %s624_s16 = smov [#allocation3]  }
   0xb   :  { %11 = dma.vmem_to_smem %s9_s14, 32, %s624_s16, [#allocation2] }
   0xc   :  { %602 = dma.done.wait [#allocation2], 32 }
   0xd   :  { %603 = vsyncadd [#allocation2], 4294967264 }
   0xe   :  { %13 = sfence }
   0xf   :  { %s652_s17 = smov 0   ;;  %s654_s18 = smov 0  }
  0x10   :  { %s656_s19 = smov 0   ;;  %s658_s0 = smov 0  }
  0x11   :  { %s660_s20 = smov 0  }
  0x12 LB: > { %s28_s21 = sadd.s32 1, %s614_s19  ;;  %s31_s22 = sadd.s32 1, %s618_s0  ;;  %s622_s20 = sphi %s660_s20, %s19_s20   ;;  %s618_s0 = sphi %s658_s0, %s746_s0   ;;  %s614_s19 = sphi %s656_s19, %s745_s19   ;;  %s610_s18 = sphi %s654_s18, %s744_s18   ;;  %s606_s17 = sphi %s652_s17, %s743_s17  }
  0x13   : > { %p29_p5 = scmp.ge.s32.totalorder %s28_s21, 2  ;;  %p492_p6 = scmp.ge.s32.totalorder %s622_s20, 1 }
  0x14   : > { %p148_p7 = scmp.lt.s32.totalorder %s622_s20, 5 }
  0x15   : > { %s748_s21 = smov (%p29_p5, %s28_s21), 0  ;;  %s750_s22 = smov (!%p29_p5, %s31_s22), %s618_s0 }
  0x16   : > { %p149_p8 = pnand %p492_p6, %p148_p7  ;;  %p33_p9 = scmp.ge.s32.totalorder %s750_s22, 2 }
  0x17   : > { %p180_p10 = scmp.lt.s32.totalorder (!%p149_p8), %s610_s18, 1  ;;  %p182_p11 = scmp.lt.s32.totalorder (!%p149_p8), %s606_s17, 1 }
  0x18   : > { %s752_s22 = smov (%p33_p9, %s750_s22), 0  ;;  %152 = sbr.rel (%p149_p8) target bundleno = 300 (0x12c), region = 28 }
  0x19   : > { %s682_s25 = sshll.u32 (!%p149_p8), %s610_s18, 7 }
  0x1a   : > { %s208_s27 = sadd.s32 (!%p149_p8), 1, %s682_s25  ;;  %s689_s29 = sld [smem:[#allocation3 + %s682_s25]] (!%p149_p8) }
  0x1b   : > { %s694_s6 = sld [smem:[#allocation3 + %s208_s27]] (!%p149_p8)  ;;  %s216_s7 = sadd.s32 (!%p149_p8), 2, %s682_s25 }
  0x1c   : > { %s252_s8 = sadd.s32 (!%p149_p8), 8, %s682_s25  ;;  %s256_s10 = sadd.s32 (!%p149_p8), 9, %s682_s25 }
  0x1d   : > { %v625_v0 = vmov 0.0   ;;  %vm626_vm0 = vmmov 0   ;;  %s181_s23 = scalar_select %p180_p10, %s610_s18, 1  ;;  %v304_v40 = vlaneseq  ;;  %v627_v52 = vmov 1.0|1.0  }
  0x1e   : > { %510 = vmatprep.subr.bf16.mxu0 %v625_v0  ;;  %512 = vmatprep.mubr.msk.bf16.mxu0 %vm626_vm0, %v625_v0  ;;  %s754_s17 = smov (!%p182_p11, %s606_s17), 1  ;;  %s253_s9 = sld [smem:[#allocation3 + %s252_s8]]  ;;  %vm325_vm6 = vcmask 130048  }
  0x1f   : > { %s493_s24 = sshll.u32 %s181_s23, 1  ;;  %s257_s11 = sld [smem:[#allocation3 + %s256_s10]]  ;;  %v305_v44 = vshrl.u32 %v304_v40, 7 }
  0x20   : > { %s684_s26 = sadd.s32 %s493_s24, %s754_s17  ;;  %s264_s12 = sadd.s32 10, %s682_s25  ;;  %v206_v11 = vstv %s689_s29 }
  0x21   : > { %s494_s28 = sshll.u32 %s684_s26, 2  ;;  %s265_s13 = sld [smem:[#allocation3 + %s264_s12]]  ;;  %v210_v7 = vstv %s694_s6  ;;  %v311_v46 = vsub.s32 0, %v305_v44  ;;  %v306_v48 = vadd.s32 8, %v305_v44 }
  0x22   : > { %s187_s5 = scalar_lea.vmem %s740_s1, %s494_s28  ;;  %s272_s14 = sadd.s32 11, %s682_s25 }
  0x23   : > { %s701_s15 = sld [smem:[#allocation3 + %s216_s7]]  ;;  %s507_s16 = sshll.u32 %s181_s23, 3  ;;  %v203_v1 = vld [vmem:[%s187_s5] sm:$0x7] }
  0x24   : > { %s706_s24 = scalar_lea.vmem %s741_s2, %s507_s16  ;;  %s228_s27 = sadd.s32 4, %s682_s25  ;;  %v254_v2 = vstv %s253_s9  ;;  %v211_v12 = vmul.f32 %v210_v7, %v203_v1  ;;  %v207_v22 = vmul.f32 %v206_v11, %v203_v1 }
  0x25   : > { %s709_s28 = sld [smem:[#allocation3 + %s272_s14]]  ;;  %s232_s4 = sadd.s32 5, %s682_s25  ;;  %v258_v3 = vstv %s257_s11  ;;  %v255_v4 = vmul.f32 %v254_v2, %v203_v1  ;;  %v567_v51 = vld [vmem:[%s706_s24] sm:$0xff]  }
  0x26   : > { %s229_s30 = sld [smem:[#allocation3 + %s228_s27]]  ;;  %s240_s7 = sadd.s32 6, %s682_s25  ;;  %v259_v5 = vmul.f32 %v258_v3, %v203_v1  ;;  %v213_v24 = vrot.slane %v211_v12, 1 }
  0x27   : > { %s233_s8 = sld [smem:[#allocation3 + %s232_s4]]  ;;  %v266_v6 = vstv %s265_s13  ;;  %s248_s5 = sadd.s32 7, %s682_s25 }
  0x28   : > { %s241_s23 = sld [smem:[#allocation3 + %s240_s7]]  ;;  %v267_v8 = vmul.f32 %v266_v6, %v203_v1  ;;  %v261_v9 = vrot.slane %v259_v5, 1  ;;  %s224_s9 = sadd.s32 3, %s682_s25  ;;  %v215_v31 = vadd.f32 %v213_v24, %v207_v22 }
  0x29   : > { %s249_s10 = sld [smem:[#allocation3 + %s248_s5]]  ;;  %v218_v15 = vstv %s701_s15  ;;  %s199_s11 = scalar_lea.vmem %s742_s3, %s684_s26 }
  0x2a   : > { %v269_v10 = vrot.slane %v267_v8, 2  ;;  %v263_v13 = vadd.f32 %v261_v9, %v255_v4  ;;  %v219_v25 = vmul.f32 %v218_v15, %v203_v1  ;;  %s225_s6 = sld [smem:[#allocation3 + %s224_s9]]  ;;  %v393_v9 = vld [vmem:[%s199_s11] sm:$0x1] }
  0x2b   : > { %v274_v16 = vstv %s709_s28 }
  0x2c   : > { %v230_v14 = vstv %s229_s30  ;;  %v271_v19 = vadd.f32 %v269_v10, %v263_v13  ;;  %v221_v32 = vrot.slane %v219_v25, 2  ;;  %v628_v10 = vmov 0  }
  0x2d   : > { %v231_v17 = vmul.f32 %v230_v14, %v203_v1  ;;  %v234_v18 = vstv %s233_s8 }
  0x2e   : > { %v235_v20 = vmul.f32 %v234_v18, %v203_v1  ;;  %v242_v21 = vstv %s241_s23  ;;  %v275_v26 = vadd.f32 %v274_v16, %v271_v19  ;;  %v223_v35 = vadd.f32 %v221_v32, %v215_v31 }
  0x2f   : > { %v243_v23 = vmul.f32 %v242_v21, %v203_v1  ;;  %v250_v30 = vstv %s249_s10 }
  0x30   : > { %v237_v27 = vrot.slane %v235_v20, 1  ;;  %568 = vrcp.f32 %v275_v26  ;;  %v226_v36 = vstv %s225_s6 }
  0x31   : > { %v245_v28 = vrot.slane %v243_v23, 2  ;;  %v227_v37 = vadd.f32 %v226_v36, %v223_v35 }
  0x32   : > { %v239_v29 = vadd.f32 %v237_v27, %v231_v17 }
  0x34   : > { %v247_v33 = vadd.f32 %v245_v28, %v239_v29 }
  0x36   : > { %v251_v34 = vadd.f32 %v250_v30, %v247_v33 }
  0x3d   : > { %v569_v38 = vpop.eup %568 }
  0x3e   : > { %v277_v39 = vmul.f32 %v569_v38, %v227_v37  ;;  %v278_v41 = vmul.f32 %v569_v38, %v251_v34 }
  0x40   : > { %v279_v42 = vmul.f32 8.0, %v277_v39  ;;  %v281_v53 = vmul.f32 8.0, %v278_v41 }
  0x42   : > { %v280_v43 = vadd.f32 7.5, %v279_v42  ;;  %v282_v54 = vadd.f32 7.5, %v281_v53 }
  0x44   : > { %v518_v45 = vcvt.f32.s32 %v280_v43  ;;  %v521_v55 = vcvt.f32.s32 %v282_v54  ;;  %vm285_vm10 = vcmp.eq.f32.partialorder %v280_v43, %v280_v43  ;;  %vm286_vm11 = vcmp.eq.f32.partialorder %v282_v54, %v282_v54 }
  0x45   : > { %vm287_vm13 = vmand %vm285_vm10, %vm286_vm11 }
  0x46   : > { %vm296_vm1 = vcmp.gt.s32.totalorder %v518_v45, 0  ;;  %vm300_vm7 = vcmp.gt.s32.totalorder %v521_v55, 0  ;;  %vm288_vm14 = vcmp.ge.s32.totalorder %v518_v45, 0  ;;  %vm290_vm0 = vcmp.lt.s32.totalorder %v518_v45, 16 }
  0x47   : > { %v297_v47 = vsel %vm296_vm1, %v518_v45, 0  ;;  %v301_v56 = vsel %vm300_vm7, %v521_v55, 0  ;;  %vm289_vm15 = vmand %vm287_vm13, %vm288_vm14  ;;  %vm391_vm7 = vsmask.f32 0 }
  0x48   : > { %vm298_vm2 = vcmp.lt.s32.totalorder %v297_v47, 15  ;;  %vm302_vm8 = vcmp.lt.s32.totalorder %v301_v56, 15  ;;  %vm291_vm1 = vmand %vm289_vm15, %vm290_vm0 }
  0x49   : > { %v299_v49 = vsel %vm298_vm2, %v297_v47, 15  ;;  %v303_v57 = vsel %vm302_vm8, %v301_v56, 15  ;;  %vm292_vm2 = vcmp.ge.s32.totalorder %v521_v55, 0 }
  0x4a   : > { %v312_v50 = vrot.slane %v299_v49, %v311_v46  ;;  %v373_v58 = vrot.slane %v303_v57, %v311_v46 }
  0x4c   : > { %vm313_vm3 = vcmp.eq.s32.totalorder %v305_v44, %v312_v50  ;;  %vm314_vm4 = vcmp.eq.s32.totalorder %v306_v48, %v312_v50  ;;  %vm374_vm9 = vcmp.eq.s32.totalorder %v305_v44, %v373_v58  ;;  %vm375_vm12 = vcmp.eq.s32.totalorder %v306_v48, %v373_v58 }
  0x4d   : > { %vm502_vm5 = vmpackc.low %vm314_vm4, %vm313_vm3  ;;  %vm294_vm4 = vcmp.lt.s32.totalorder %v521_v55, 16 }
  0x4e   : > { %511 = vmatpush3.bf16.msk.msra.mxu0 %vm502_vm5, %v627_v52  ;;  %vm293_vm3 = vmand %vm291_vm1, %vm292_vm2 }
  0x4f   : > { %vm295_vm5 = vmand %vm293_vm3, %vm294_vm4 }
  0x51   : > { %513 = vmatmul.mubr.msk.bf16.vlgmr.msra.gmra.mxu0 %vm325_vm6, %v567_v51  ;;  %vm390_vm6 = vcmask 1040384  }
 0x111   : > { %v363_v59 = vpop.f32.mrf.mxu0 }
 0x112   : > { %v376_v62 = vsel %vm374_vm9, %v363_v59, 0.0  ;;  %vm392_vm9 = vmand %vm390_vm6, %vm391_vm7 }
 0x113   : > { %v514_v60 = vpop.f32.mrf.mxu0 }
 0x115   : > { %v366_v61 = vpop.f32.mrf.mxu0 }
 0x116   : > { %v377_v63 = vsel %vm375_vm12, %v366_v61, 0.0 }
 0x117   : > { %v378_v0 = vadd.f32 %v377_v63, %v376_v62  ;;  %v515_v1 = vpop.f32.mrf.mxu0 }
 0x119   : > { %v379_v2 = vrot.slane %v378_v0, 4 }
 0x11b   : > { %v380_v3 = vadd.f32 %v379_v2, %v378_v0 }
 0x11d   : > { %v381_v4 = vrot.slane %v380_v3, 2 }
 0x11f   : > { %v382_v5 = vadd.f32 %v381_v4, %v380_v3 }
 0x121   : > { %v383_v6 = vrot.slane %v382_v5, 1 }
 0x123   : > { %v384_v7 = vadd.f32 %v383_v6, %v382_v5 }
 0x125   : > { %v385_v8 = vsel %vm295_vm5, %v384_v7, 0.0 }
 0x126   : > { %vm386_vm8 = vcmp.lt.f32.partialorder %v385_v8, 0.97 }
 0x127   : > { %vm387_vm10 = vmpackc.low %vm386_vm8, %vm386_vm8 }
 0x128   : > { %vm388_vm11 = vmpackc.even %vm387_vm10, %vm387_vm10 }
 0x129   : > { %v389_v11 = vsel %vm388_vm11, 16843009, %v628_v10 }
 0x12a   : > { %v394_v12 = vsel %vm392_vm9, %v389_v11, %v393_v9 }
 0x12b   : > { %395 = vst [vmem:[%s199_s11] sm:$0x1] %v394_v12 }
 0x12c PF: > { %s19_s20 = sadd.s32 1, %s622_s20   ;;  %s743_s17 = smov %s614_s19 }
 0x12d   : > { %p16_p12 = scmp.ge.s32.totalorder %s19_s20, 6   ;;  %s744_s18 = smov %s618_s0 }
 0x12e   : > { %s745_s19 = smov %s748_s21  ;;  %s746_s0 = smov %s752_s22 }
 0x12f   :  { %18 = sbr.rel (!%p16_p12) target bundleno = 18 (0x12), region = 61 }

</bundles_post_ra>
